<compile_context>
chip_gen: v6e
topology: v6e:2x2x1
jax: 0.10.0
libtpu: 0.0.40
codegen_flags: <defaults>
</compile_context>

<pallas_src>
import jax
import jax.numpy as jnp
from jax import lax
from jax.experimental import pallas as pl
from jax.experimental.pallas import tpu as pltpu


def _silu(x):
    return x * jax.nn.sigmoid(x)


def _clip_raw(raw, period):
    if period == 93000:
        return jnp.clip(raw - 0.5, -1.0, 1.0)
    return jnp.clip(raw, -1.0, 2.0)


def _round_up(x, m):
    return ((x + m - 1) // m) * m


# ---------------------------------------------------------------------------
# Kernel 1 (single pass): per-industry counts and unscaled sums M' = 1hot^T@raw
#   grid = (shards, tiles_per_shard); shard axis is "parallel" (v7x megacore),
#   tile axis is "arbitrary" (accumulator).  Outputs are per-shard partials.
# ---------------------------------------------------------------------------
def _make_stats_kernel(period, n_ind_p):
    def kernel(raw_ref, ids_ref, cnt_ref, m_ref):
        t = pl.program_id(1)

        @pl.when(t == 0)
        def _():
            cnt_ref[...] = jnp.zeros_like(cnt_ref)
            m_ref[...] = jnp.zeros_like(m_ref)

        raw = raw_ref[...]
        if raw.dtype != jnp.float32:
            raw = raw.astype(jnp.float32)
        raw = _clip_raw(raw, period)

        ids = ids_ref[...]                                   # (1, T) int32
        tile = ids.shape[-1]
        iota = lax.broadcasted_iota(jnp.int32, (n_ind_p, tile), 0)
        onehot_t = (iota == ids).astype(jnp.float32)         # (Nind_p, T)
        # Padded rows carry id = -1 -> all-zero one-hot column -> no effect.

        cnt_ref[...] = cnt_ref[...] + jnp.sum(onehot_t, axis=1, keepdims=True)
        m_ref[...] = m_ref[...] + jnp.dot(onehot_t, raw,
                                          preferred_element_type=jnp.float32)

    return kernel


# ---------------------------------------------------------------------------
# Kernel 2: per-batch-tile network compute -> lane-dense y row block (1, T)
# ---------------------------------------------------------------------------
def _make_main_kernel(period, n_ind_p, cross_num, n_deep_hidden):
    def mm(a, b):
        return jnp.dot(a, b, preferred_element_type=jnp.float32)

    def kernel(*refs):
        idx = 0
        raw_ref = refs[idx]; idx += 1       # [TILE_N, K]
        ids_ref = refs[idx]; idx += 1       # [1, TILE_N] int32
        cnt_ref = refs[idx]; idx += 1       # [Nind_p, 1]  member counts
        m_ref = refs[idx]; idx += 1         # [Nind_p, K]  scaled M
        if cross_num > 0:
            cw_ref = refs[idx]; idx += 1    # [C, K, K] (in, out)
            cb_ref = refs[idx]; idx += 1    # [C, 1, K]
        w1a_ref = refs[idx]; idx += 1       # [K, H1] rows of W1 for `first`
        w1b_ref = refs[idx]; idx += 1       # [K, H1] rows of W1 for raw - gf
        b1_ref = refs[idx]; idx += 1        # [1, H1]
        deep = []
        for _ in range(n_deep_hidden):
            deep.append((refs[idx], refs[idx + 1])); idx += 2
        wft_ref = refs[idx]; idx += 1       # [1, Hlast]  (wf transposed)
        bf_ref = refs[idx]; idx += 1        # [1, 1]
        y_ref = refs[idx]                   # [1, TILE_N]

        raw = raw_ref[...]
        if raw.dtype != jnp.float32:
            raw = raw.astype(jnp.float32)
        raw = _clip_raw(raw, period)

        ids = ids_ref[...]                                   # (1, T)
        tile = ids.shape[-1]
        iota = lax.broadcasted_iota(jnp.int32, (n_ind_p, tile), 0)
        onehot_t = (iota == ids).astype(jnp.float32)         # (Nind_p, T)

        # colsum_i = count[id_i] - 1 + eps ;  s_i = raw_i / colsum_i
        colsum = lax.dot_general(
            onehot_t, cnt_ref[...], (((0,), (0,)), ((), ())),
            preferred_element_type=jnp.float32) - 1.0 + 1e-8       # (T, 1)
        s = raw / colsum
        # graph_feature_i = M[id_i] - s_i   (row gather via one-hot matmul)
        graph_feature = lax.dot_general(
            onehot_t, m_ref[...], (((0,), (0,)), ((), ())),
            preferred_element_type=jnp.float32) - s                # (T, K)

        # Cross model: f = raw * (f @ Wc + bc) + f
        feature = raw
        for c in range(cross_num):
            cross = mm(feature, cw_ref[c]) + cb_ref[c]
            feature = raw * cross + feature

        # Layer_nn on hstack([first, raw - graph_feature]) with W1 row-split
        # (avoids the lane-axis concatenate + layout copy).
        h = _silu(mm(feature, w1a_ref[...])
                  + mm(raw - graph_feature, w1b_ref[...])
                  + b1_ref[...])

        # Deep model hidden layers: Linear + SiLU
        for w_ref, b_ref in deep:
            h = _silu(mm(h, w_ref[...]) + b_ref[...])

        # Final Linear(Hlast, 1), emitted lane-dense: (h @ wf)^T = wf^T @ h^T
        y_ref[...] = lax.dot_general(
            wft_ref[...], h, (((1,), (1,)), ((), ())),
            preferred_element_type=jnp.float32) + bf_ref[...]      # (1, T)

    return kernel


# ---------------------------------------------------------------------------
# Kernel 3: BatchNorm1d(1), training mode, on the lane-dense (1, N) row
# ---------------------------------------------------------------------------
def _bn_kernel(y_ref, g_ref, b_ref, o_ref):
    y = y_ref[...]                                        # (1, N)
    mean = jnp.mean(y, axis=1, keepdims=True)
    var = jnp.mean((y - mean) ** 2, axis=1, keepdims=True)
    o_ref[...] = (y - mean) * lax.rsqrt(var + 1e-5) * g_ref[...] + b_ref[...]


# ---------------------------------------------------------------------------
# Wrapper
# ---------------------------------------------------------------------------
def net2_forward_pallas(raw_feature, industry_dummy, params, *,
                        period, cross_num, tile_n=4096, stream_raw_bf16=False):
    n, k = raw_feature.shape
    n_ind = industry_dummy.shape[1]
    n_ind_p = _round_up(n_ind, 8)          # sublane-aligned industry count

    # industry_dummy is a 0/1 one-hot dummy matrix (as in the reference usage);
    # convert it to integer ids once here so the kernels never stream it.
    ids = jnp.argmax(industry_dummy, axis=1).astype(jnp.int32)

    # Batch tiling: lane-dense blocks need tile_n to be a multiple of 128.
    tile_n = _round_up(max(int(tile_n), 128), 128)
    tile_n = min(tile_n, _round_up(n, 128))
    shards = 2 if (n + tile_n - 1) // tile_n >= 2 else 1   # v7x megacore shards
    n_pad = _round_up(n, shards * tile_n)
    num_tiles = n_pad // tile_n
    tiles_per_shard = num_tiles // shards

    raw_p = raw_feature
    if n_pad != n:
        raw_p = jnp.pad(raw_p, ((0, n_pad - n), (0, 0)))
    if stream_raw_bf16:
        raw_p = raw_p.astype(jnp.bfloat16)   # halves HBM bytes; upcast in-kernel
    # Padded rows get sentinel id -1 -> all-zero one-hot -> no stats pollution.
    ids_row = jnp.pad(ids, (0, n_pad - n), constant_values=-1).reshape(1, n_pad)

    vmem_limit = 32 * 1024 * 1024

    # ---- Pass 1: single-sweep batch statistics (per-shard partials) ----
    cnt_part, m_part = pl.pallas_call(
        _make_stats_kernel(period, n_ind_p),
        grid=(shards, tiles_per_shard),
        in_specs=[
            pl.BlockSpec((tile_n, k),
                         lambda c, t: (c * tiles_per_shard + t, 0)),
            pl.BlockSpec((1, tile_n),
                         lambda c, t: (0, c * tiles_per_shard + t)),
        ],
        out_specs=[
            pl.BlockSpec((n_ind_p, 1), lambda c, t: (c, 0)),
            pl.BlockSpec((n_ind_p, k), lambda c, t: (c, 0)),
        ],
        out_shape=(
            jax.ShapeDtypeStruct((shards * n_ind_p, 1), jnp.float32),
            jax.ShapeDtypeStruct((shards * n_ind_p, k), jnp.float32),
        ),
        compiler_params=pltpu.CompilerParams(
            dimension_semantics=("parallel", "arbitrary"),
            vmem_limit_bytes=vmem_limit),
    )(raw_p, ids_row)

    counts = cnt_part.reshape(shards, n_ind_p, 1).sum(axis=0)       # [Nind_p,1]
    m_mat = m_part.reshape(shards, n_ind_p, k).sum(axis=0)
    m_mat = m_mat / (counts - 1.0 + 1e-8)                           # scaled M

    # ---- Pass 2: per-tile network compute (batch axis parallel) ----
    def resident(arr):
        nd = arr.ndim
        return pl.BlockSpec(arr.shape, lambda t, _nd=nd: (0,) * _nd)

    w1a = params["w1"][:k]     # rows multiplying `first_output`
    w1b = params["w1"][k:]     # rows multiplying (raw - graph_feature)
    wf_t = jnp.transpose(params["wf"])      # [1, Hlast]

    weights = [counts, m_mat]
    if cross_num > 0:
        weights += [params["cross_w"], params["cross_b"]]
    weights += [w1a, w1b, params["b1"]]
    for w, b in params["deep"]:
        weights += [w, b]
    weights += [wf_t, params["bf"]]

    main_kernel = _make_main_kernel(period, n_ind_p, cross_num,
                                    len(params["deep"]))
    y_full = pl.pallas_call(
        main_kernel,
        grid=(num_tiles,),
        in_specs=[pl.BlockSpec((tile_n, k), lambda t: (t, 0)),
                  pl.BlockSpec((1, tile_n), lambda t: (0, t))]
                + [resident(w) for w in weights],
        out_specs=pl.BlockSpec((1, tile_n), lambda t: (0, t)),
        out_shape=jax.ShapeDtypeStruct((1, n_pad), jnp.float32),
        compiler_params=pltpu.CompilerParams(
            dimension_semantics=("parallel",),
            vmem_limit_bytes=vmem_limit),
    )(raw_p, ids_row, *weights)

    # ---- Pass 3: full-batch BatchNorm over the valid N columns (lane-dense).
    # TODO(synk): nn.BatchNorm1d also updates running_mean/var buffers in
    # training; that stateful side effect is not reproduced here.
    vmem = pl.BlockSpec(memory_space=pltpu.MemorySpace.VMEM)
    out_row = pl.pallas_call(
        _bn_kernel,
        out_shape=jax.ShapeDtypeStruct((1, n), jnp.float32),
        in_specs=[vmem, vmem, vmem],
        out_specs=vmem,
    )(y_full[:, :n], params["bn_gamma"], params["bn_beta"])
    return out_row.reshape(n, 1)


# ---------------------------------------------------------------------------
# Pure-JAX reference (mirrors the PyTorch forward, training-mode BN)
# ---------------------------------------------------------------------------
def net2_forward_ref(raw_feature, industry_dummy, params, *, period, cross_num):
    raw = (jnp.clip(raw_feature - 0.5, -1.0, 1.0) if period == 93000
           else jnp.clip(raw_feature, -1.0, 2.0))
    n = raw.shape[0]
    graph = industry_dummy @ industry_dummy.T - jnp.eye(n, dtype=jnp.float32)
    graph_feature = (graph / (graph.sum(axis=0) + 1e-8)) @ raw
    feature = raw
    for c in range(cross_num):
        cross = feature @ params["cross_w"][c] + params["cross_b"][c]
        feature = raw * cross + feature
    all_out = jnp.concatenate([feature, raw - graph_feature], axis=1)
    h = _silu(all_out @ params["w1"] + params["b1"])
    for w, b in params["deep"]:
        h = _silu(h @ w + b)
    y = h @ params["wf"] + params["bf"]
    mean = jnp.mean(y, axis=0, keepdims=True)
    var = jnp.mean((y - mean) ** 2, axis=0, keepdims=True)
    return (y - mean) / jnp.sqrt(var + 1e-5) * params["bn_gamma"] + params["bn_beta"]


if __name__ == "__main__":
    # Config mirrors Net2.__init__:
    #   factor_num=24, ml_num=8  -> input_size K = 32
    #   args.nn_szs = [32, 16]   -> nn_szs = [32, 32, 16]
    #   Layer_nn: Linear(64, 32)+SiLU ; Deep: Linear(32,16)+SiLU, Linear(16,1)
    #   cross_num = 2, period = 93000
    N, FACTOR_NUM, ML_NUM, N_IND = 300, 24, 8, 4
    K = FACTOR_NUM + ML_NUM
    NN_SZS = [K, 32, 16]
    CROSS_NUM = 2
    PERIOD = 93000
    # 128-row tile so the demo exercises multi-tile grid, shard axis, padding.
    TILE_N = 128

    key = jax.random.PRNGKey(0)
    keys = iter(jax.random.split(key, 32))

    raw_feature = jax.random.normal(next(keys), (N, K), dtype=jnp.float32)
    # Deterministic one-hot industry assignment with many members per industry.
    ind_ids = jnp.arange(N) % N_IND
    industry_dummy = jax.nn.one_hot(ind_ids, N_IND, dtype=jnp.float32)

    def linear_params(key_, in_sz, out_sz):
        kw, kb = jax.random.split(key_)
        bound = 1.0 / jnp.sqrt(in_sz)
        w = jax.random.uniform(kw, (in_sz, out_sz), jnp.float32, -bound, bound)
        b = jax.random.uniform(kb, (1, out_sz), jnp.float32, -bound, bound)
        return w, b

    # Cross layers: stacked [C, K, K] / [C, 1, K]
    cws, cbs = [], []
    for _ in range(CROSS_NUM):
        w, b = linear_params(next(keys), K, K)
        cws.append(w); cbs.append(b)
    params = {"cross_w": jnp.stack(cws), "cross_b": jnp.stack(cbs)}
    # Layer_nn: Linear(2K, NN_SZS[1])
    params["w1"], params["b1"] = linear_params(next(keys), 2 * K, NN_SZS[1])
    # Deep model hidden layers over nn_szs[1:]
    deep_szs = NN_SZS[1:]
    deep = []
    for in_sz, out_sz in zip(deep_szs[:-1], deep_szs[1:]):
        deep.append(linear_params(next(keys), in_sz, out_sz))
    params["deep"] = deep
    # Final Linear(last, 1)
    params["wf"], params["bf"] = linear_params(next(keys), deep_szs[-1], 1)
    # BatchNorm1d(1) affine params (PyTorch default init: gamma=1, beta=0)
    params["bn_gamma"] = jnp.ones((1, 1), jnp.float32)
    params["bn_beta"] = jnp.zeros((1, 1), jnp.float32)

    out = net2_forward_pallas(raw_feature, industry_dummy, params,
                              period=PERIOD, cross_num=CROSS_NUM,
                              tile_n=TILE_N)
    out = jax.block_until_ready(out)

    ref = net2_forward_ref(raw_feature, industry_dummy, params,
                           period=PERIOD, cross_num=CROSS_NUM)
    assert out.shape == (N, 1)
    assert jnp.allclose(out, ref, rtol=1e-4, atol=1e-4), (out, ref)
    print("KERNEL_OK")
</pallas_src>

<mosaic_0001>
module attributes {stable_mosaic.version = 11 : i64} {
  func.func @kernel(%arg0: i32, %arg1: i32, %arg2: memref<128x32xf32, #tpu.memory_space<vmem>>, %arg3: memref<1x128xi32, #tpu.memory_space<vmem>>, %arg4: memref<8x1xf32, #tpu.memory_space<vmem>>, %arg5: memref<8x32xf32, #tpu.memory_space<vmem>>) attributes {dimension_semantics = [#tpu.dimension_semantics<parallel>, #tpu.dimension_semantics<arbitrary>], iteration_bounds = array<i64: 2, 2>, scalar_prefetch = 0 : i64, scratch_operands = 0 : i64, tpu.core_type = #tpu.core_type<tc>, window_params = [{transform_indices = @transform_0, window_bounds = array<i64: 128, 32>}, {transform_indices = @transform_1, window_bounds = array<i64: 1, 128>}, {transform_indices = @transform_2, window_bounds = array<i64: 8, 1>}, {transform_indices = @transform_3, window_bounds = array<i64: 8, 32>}]} {
    %c0_i32 = arith.constant 0 : i32
    %0 = arith.cmpi eq, %arg1, %c0_i32 : i32
    %1 = arith.extui %0 : i1 to i32
    %c0_i32_0 = arith.constant 0 : i32
    %2 = arith.cmpi ne, %1, %c0_i32_0 : i32
    scf.if %2 {
      %cst_16 = arith.constant 0.000000e+00 : f32
      %25 = vector.broadcast %cst_16 : f32 to vector<8x1xf32>
      %c0_17 = arith.constant 0 : index
      %c0_18 = arith.constant 0 : index
      %26 = vector.load %arg4[%c0_17, %c0_18] : memref<8x1xf32, #tpu.memory_space<vmem>>, vector<8x1xf32>
      tpu.vector_store %arg4[%c0_17, %c0_18], %25 {strides = array<i32>} : memref<8x1xf32, #tpu.memory_space<vmem>>, vector<8x1xf32>,
      %cst_19 = arith.constant 0.000000e+00 : f32
      %27 = vector.broadcast %cst_19 : f32 to vector<8x32xf32>
      %c0_20 = arith.constant 0 : index
      %c0_21 = arith.constant 0 : index
      %28 = vector.load %arg5[%c0_20, %c0_21] : memref<8x32xf32, #tpu.memory_space<vmem>>, vector<8x32xf32>
      tpu.vector_store %arg5[%c0_20, %c0_21], %27 {strides = array<i32>} : memref<8x32xf32, #tpu.memory_space<vmem>>, vector<8x32xf32>,
    } else {
    }
    %c0 = arith.constant 0 : index
    %c0_1 = arith.constant 0 : index
    %3 = vector.load %arg2[%c0, %c0_1] : memref<128x32xf32, #tpu.memory_space<vmem>>, vector<128x32xf32>
    %cst = arith.constant 5.000000e-01 : f32
    %4 = vector.broadcast %cst : f32 to vector<128x32xf32>
    %5 = arith.subf %3, %4 : vector<128x32xf32>
    %cst_2 = arith.constant -1.000000e+00 : f32
    %cst_3 = arith.constant 1.000000e+00 : f32
    %6 = vector.broadcast %cst_2 : f32 to vector<128x32xf32>
    %7 = arith.maximumf %6, %5 : vector<128x32xf32>
    %8 = vector.broadcast %cst_3 : f32 to vector<128x32xf32>
    %9 = arith.minimumf %8, %7 : vector<128x32xf32>
    %c0_4 = arith.constant 0 : index
    %c0_5 = arith.constant 0 : index
    %10 = vector.load %arg3[%c0_4, %c0_5] : memref<1x128xi32, #tpu.memory_space<vmem>>, vector<1x128xi32>
    %11 = tpu.iota {dimensions = array<i32: 0>} : vector<8x128xi32>
    %12 = vector.broadcast %10 : vector<1x128xi32> to vector<8x128xi32>
    %13 = arith.cmpi eq, %11, %12 : vector<8x128xi32>
    %14 = arith.extui %13 : vector<8x128xi1> to vector<8x128xi32>
    %15 = arith.sitofp %14 : vector<8x128xi32> to vector<8x128xf32>
    %c0_6 = arith.constant 0 : index
    %c0_7 = arith.constant 0 : index
    %16 = vector.load %arg4[%c0_6, %c0_7] : memref<8x1xf32, #tpu.memory_space<vmem>>, vector<8x1xf32>
    %cst_8 = arith.constant dense<0.000000e+00> : vector<8xf32>
    %17 = vector.multi_reduction <add>, %15, %cst_8 [1] : vector<8x128xf32> to vector<8xf32>
    %18 = vector.shape_cast %17 : vector<8xf32> to vector<8x1xf32>
    %19 = arith.addf %16, %18 : vector<8x1xf32>
    %c0_9 = arith.constant 0 : index
    %c0_10 = arith.constant 0 : index
    %20 = vector.load %arg4[%c0_9, %c0_10] : memref<8x1xf32, #tpu.memory_space<vmem>>, vector<8x1xf32>
    tpu.vector_store %arg4[%c0_9, %c0_10], %19 {strides = array<i32>} : memref<8x1xf32, #tpu.memory_space<vmem>>, vector<8x1xf32>,
    %c0_11 = arith.constant 0 : index
    %c0_12 = arith.constant 0 : index
    %21 = vector.load %arg5[%c0_11, %c0_12] : memref<8x32xf32, #tpu.memory_space<vmem>>, vector<8x32xf32>
    %cst_13 = arith.constant dense<0.000000e+00> : vector<8x32xf32>
    %22 = tpu.matmul %15, %9, %cst_13 {dimension_numbers = #tpu.dot_dimension_numbers<[1], [0], [0], [1], [0, 0, 1, 1], [], []>} : vector<8x128xf32>, vector<128x32xf32>, vector<8x32xf32> -> vector<8x32xf32>
    %23 = arith.addf %21, %22 : vector<8x32xf32>
    %c0_14 = arith.constant 0 : index
    %c0_15 = arith.constant 0 : index
    %24 = vector.load %arg5[%c0_14, %c0_15] : memref<8x32xf32, #tpu.memory_space<vmem>>, vector<8x32xf32>
    tpu.vector_store %arg5[%c0_14, %c0_15], %23 {strides = array<i32>} : memref<8x32xf32, #tpu.memory_space<vmem>>, vector<8x32xf32>,
    return
  }
  func.func @transform_0(%arg0: i32, %arg1: i32) -> (i32, i32) {
    %c2_i32 = arith.constant 2 : i32
    %0 = arith.muli %arg0, %c2_i32 : i32
    %1 = arith.addi %0, %arg1 : i32
    %c0_i32 = arith.constant 0 : i32
    %c0_i32_0 = arith.constant 0 : i32
    return %1, %c0_i32 : i32, i32
  }
  func.func @transform_1(%arg0: i32, %arg1: i32) -> (i32, i32) {
    %c2_i32 = arith.constant 2 : i32
    %0 = arith.muli %arg0, %c2_i32 : i32
    %1 = arith.addi %0, %arg1 : i32
    %c0_i32 = arith.constant 0 : i32
    %c0_i32_0 = arith.constant 0 : i32
    return %c0_i32, %1 : i32, i32
  }
  func.func @transform_2(%arg0: i32, %arg1: i32) -> (i32, i32) {
    %c0_i32 = arith.constant 0 : i32
    %c0_i32_0 = arith.constant 0 : i32
    return %arg0, %c0_i32 : i32, i32
  }
  func.func @transform_3(%arg0: i32, %arg1: i32) -> (i32, i32) {
    %c0_i32 = arith.constant 0 : i32
    %c0_i32_0 = arith.constant 0 : i32
    return %arg0, %c0_i32 : i32, i32
  }
}

</mosaic_0001>

<bundles_post_ra>
// kernel: tpu_custom_call.1
= control target key start
LH: loop header
LB: loop body
LE: loop exit
PB: predicated region body
PF: predicated region fallthrough
CT: control target
= control target key end

     0   :  { %9 = vsyncpa [#allocation3], 0  ;;  %s1023_s0 = inlined_call_operand.vmem [shape: f32[512,32], index: 0, kind: input, shape index: {}]   ;;  %s1024_s1 = inlined_call_operand.vmem [shape: s32[1,512], index: 1, kind: input, shape index: {}]   ;;  %s1025_s2 = inlined_call_operand.vmem [shape: f32[16,1], index: 2, kind: output, shape index: {0}]   ;;  %s1026_s3 = inlined_call_operand.hbm [shape: f32[16,32], index: 3, kind: output, shape index: {1}]  }
   0x1   :  { %11 = vsyncpa [#allocation3 + $0x1], 0  ;;  %s823_s12 = smov 0   ;;  %s825_s13 = smov 0  }
   0x2   :  { %s827_s14 = smov 0   ;;  %s829_s15 = smov 0  }
   0x3   :  { %s831_s16 = smov 0   ;;  %s833_s17 = smov 0  }
   0x4   :  { %s835_s18 = smov 0   ;;  %s837_s19 = smov 0  }
   0x5 LB: > { %s522_s20 = sadd.s32 4294967295, %s796_s19   ;;  %s523_s21 = sadd.s32 4294967294, %s796_s19   ;;  %s796_s19 = sphi %s837_s19, %s17_s19   ;;  %s792_s18 = sphi %s835_s18, %s1042_s18   ;;  %s788_s17 = sphi %s833_s17, %s1041_s17   ;;  %s784_s16 = sphi %s831_s16, %s1040_s16   ;;  %s780_s15 = sphi %s829_s15, %s1039_s15   ;;  %s776_s14 = sphi %s827_s14, %s1038_s14   ;;  %s772_s13 = sphi %s825_s13, %s1037_s13   ;;  %s768_s12 = sphi %s823_s12, %s1036_s12  }
   0x6   : > { %s26_s22 = sadd.s32 1, %s788_s17  ;;  %s29_s23 = sadd.s32 1, %s792_s18 }
   0x7   : > { %p27_p0 = scmp.ge.s32.totalorder %s26_s22, 2  ;;  %p132_p1 = scmp.ne.s32.totalorder %s776_s14, %s772_s13 }
   0x8   : > { %p133_p2 = scmp.eq.s32.totalorder %s522_s20, 3  ;;  %p138_p4 = scmp.ne.s32.totalorder %s772_s13, %s768_s12 }
   0x9   : > { %s1044_s22 = smov (%p27_p0, %s26_s22), 0  ;;  %s1046_s23 = smov (!%p27_p0, %s29_s23), %s792_s18 }
   0xa   : > { %1029 = sst [smem:[#allocation5_spill]] %s1044_s22  ;;  %p872_p3 = por %p133_p2, %p132_p1 }
   0xb   : > { %p31_p5 = scmp.ge.s32.totalorder %s1046_s23, 2  ;;  %p139_p6 = scmp.eq.s32.totalorder %s523_s21, 3 }
   0xc   : > { %p530_p7 = scmp.ge.s32.totalorder %s796_s19, 1  ;;  %p180_p8 = scmp.lt.s32.totalorder %s796_s19, 5 }
   0xd   : > { %s1048_s23 = smov (%p31_p5, %s1046_s23), 0  ;;  %p882_p9 = por %p139_p6, %p138_p4 }
   0xe   : > { %1031 = sst [smem:[#allocation6_spill]] %s1048_s23  ;;  %p181_p10 = pnand %p530_p7, %p180_p8 }
   0xf   : > { %s119_s26 = ssub.s32 %s792_s18, %s1048_s23  ;;  %s122_s27 = sadd.s32 1, %s776_s14 }
  0x10   : > { %p120_p11 = scmp.eq.s32.totalorder %s119_s26, 0  ;;  %184 = sbr.rel (%p181_p10) target bundleno = 279 (0x117), region = 28 }
  0x11   : > { %s1027_s29 = sand.u32 (!%p181_p10), 1, %s772_s13   ;;  %s532_s30 = sshll.u32 (!%p181_p10), %s784_s16, 1 }
  0x12   : > { %s890_s28 = scalar_select %p120_p11, %s776_s14, %s122_s27  }
  0x13   : > { %s531_s4 = sshll.u32 (!%p181_p10), %s1027_s29, 3  ;;  %s216_s5 = sadd.s32 (!%p181_p10), %s780_s15, %s532_s30 }
  0x14   : > { %s533_s6 = sshll.u32 (!%p181_p10), %s216_s5, 4  ;;  %p227_p13 = scmp.lt.s32.totalorder (!%p181_p10), %s216_s5, 3 }
  0x15   : > { %p218_p12 = scmp.lt.s32.totalorder %s533_s6, 63  ;;  %p232_p0 = scmp.lt.s32.totalorder %s784_s16, 1 }
  0x16   : > { %s1052_s5 = smov (!%p227_p13, %s216_s5), 3  ;;  %s915_s22 = scalar_lea.vmem [#allocation2], %s531_s4 }
  0x17   : > { %s1050_s6 = smov (!%p218_p12, %s533_s6), 63  ;;  %s229_s21 = scalar_lea.vmem %s1024_s1, %s1052_s5 }
  0x18   : > { %s534_s7 = sshll.u32 %s1050_s6, 3  ;;  %p537_p1 = scmp.ne.s32.totalorder %s780_s15, 0 }
  0x19   : > { %s903_s10 = scalar_lea.vmem %s1023_s0, %s534_s7 }
  0x1a   : > { %s233_s26 = scalar_select %p232_p0, %s784_s16, 1 }
  0x1b   : > { %239 = sbr.rel (%p537_p1) target bundleno = 35 (0x23), region = 32 }
  0x1c   : > { %s536_s27 = sshll.u32 %s233_s26, 3 }
  0x1d   : > { %s913_s23 = scalar_lea.vmem %s1025_s2, %s536_s27 }
  0x20   : > { %vm240_vm0 = vcmask 7168   ;;  %vm242_vm1 = vcmask 261120   ;;  %v798_v0 = vmov 0.0  }
  0x21   : > { %241 = vst.msk [vmem:[%s913_s23] sm:$0xff] %vm240_vm0, %v798_v0 }
  0x22   : > { %243 = vst.msk [vmem:[%s915_s22] sm:$0xff] %vm242_vm1, %v798_v0 }
  0x23 PF: > { %v259_v1 = vld [vmem:[%s903_s10 + $0x78] sm:$0xff]  ;;  %v258_v2 = vld [vmem:[%s903_s10 + $0x70] sm:$0xff]  ;;  %v257_v3 = vld [vmem:[%s903_s10 + $0x68] sm:$0xff]  ;;  %v799_v4 = vmov 0.0   ;;  %vm800_vm2 = vmmov 0   ;;  %v309_v16 = vlaneseq  ;;  %v801_v54 = vmov 1.0  }
  0x24   : > { %594 = vmatprep.subr.mxu0 %v799_v4  ;;  %v553_v5 = vadd.f32 -0.5, %v259_v1  ;;  %v552_v6 = vadd.f32 -0.5, %v258_v2  ;;  %v551_v7 = vadd.f32 -0.5, %v257_v3  ;;  %v256_v8 = vld [vmem:[%s903_s10 + $0x60] sm:$0xff]  ;;  %626 = vmatprep.mubr.msk.f32.mxu0 %vm800_vm2, %v799_v4  ;;  %v255_v9 = vld [vmem:[%s903_s10 + $0x58] sm:$0xff]  ;;  %v254_v13 = vld [vmem:[%s903_s10 + $0x50] sm:$0xff] }
  0x25   : > { %v550_v12 = vadd.f32 -0.5, %v256_v8  ;;  %v549_v15 = vadd.f32 -0.5, %v255_v9  ;;  %v253_v17 = vld [vmem:[%s903_s10 + $0x48] sm:$0xff]  ;;  %v548_v19 = vadd.f32 -0.5, %v254_v13  ;;  %v252_v20 = vld [vmem:[%s903_s10 + $0x40] sm:$0xff]  ;;  %v310_v24 = vshrl.u32 %v309_v16, 7 }
  0x26   : > { %v569_v10 = vclamps-f32 %v553_v5, 1.0  ;;  %v568_v11 = vclamps-f32 %v552_v6, 1.0  ;;  %v567_v14 = vclamps-f32 %v551_v7, 1.0  ;;  %v937_v21 = vld [vmem:[%s229_s21] ss:$0 sm:$0xff]  ;;  %v547_v23 = vadd.f32 -0.5, %v253_v17 }
  0x27   : > { %v566_v18 = vclamps-f32 %v550_v12, 1.0  ;;  %v565_v22 = vclamps-f32 %v549_v15, 1.0  ;;  %v251_v25 = vld [vmem:[%s903_s10 + $0x38] sm:$0xff]  ;;  %v564_v26 = vclamps-f32 %v548_v19, 1.0  ;;  %v546_v27 = vadd.f32 -0.5, %v252_v20  ;;  %v250_v28 = vld [vmem:[%s903_s10 + $0x30] sm:$0xff] }
  0x28   : > { %595 = vmatpush3.msra.mxu0 %v569_v10  ;;  %vm315_vm3 = vcmp.eq.s32.totalorder %v310_v24, %v937_v21  ;;  %v563_v30 = vclamps-f32 %v547_v23, 1.0  ;;  %v545_v31 = vadd.f32 -0.5, %v251_v25  ;;  %v249_v32 = vld [vmem:[%s903_s10 + $0x28] sm:$0xff]  ;;  %v544_v34 = vadd.f32 -0.5, %v250_v28  ;;  %v248_v35 = vld [vmem:[%s903_s10 + $0x20] sm:$0xff]  ;;  %v247_v38 = vld [vmem:[%s903_s10 + $0x18] sm:$0xff] }
  0x29   : > { %596 = vmatprep.subr.mxu0 %v799_v4  ;;  %v571_v29 = vsel %vm315_vm3, 1.0, %v799_v4  ;;  %v562_v33 = vclamps-f32 %v546_v27, 1.0  ;;  %v543_v37 = vadd.f32 -0.5, %v249_v32  ;;  %v542_v40 = vadd.f32 -0.5, %v248_v35  ;;  %v246_v41 = vld [vmem:[%s903_s10 + $0x10] sm:$0xff]  ;;  %v245_v44 = vld [vmem:[%s903_s10 + $0x8] sm:$0xff] }
  0x2a   : > { %597 = vmatpush3.msra.mxu0 %v568_v11  ;;  %319 = vadd.xlane.f32.xlu0 %v571_v29  ;;  %v561_v36 = vclamps-f32 %v545_v31, 1.0  ;;  %v560_v39 = vclamps-f32 %v544_v34, 1.0  ;;  %v541_v43 = vadd.f32 -0.5, %v247_v38  ;;  %v540_v46 = vadd.f32 -0.5, %v246_v41  ;;  %v244_v47 = vld [vmem:[%s903_s10] sm:$0xff]  ;;  %s574_s4 = sshll.u32 %s784_s16, 7 }
  0x2b   : > { %598 = vmatprep.subr.mxu0 %v799_v4  ;;  %v559_v42 = vclamps-f32 %v543_v37, 1.0  ;;  %v558_v45 = vclamps-f32 %v542_v40, 1.0  ;;  %v539_v49 = vadd.f32 -0.5, %v245_v44  ;;  %v538_v51 = vadd.f32 -0.5, %v244_v47  ;;  %v318_v55 = vld [vmem:[%s913_s23] sm:$0xff]  ;;  %s419_s5 = sshll.u32 %s915_s22, 4  ;;  %s974_s8 = scalar_lea.hbm %s1026_s3, %s574_s4  ;;  %s420_s5 = int_to_ptr.vmem [resolvable:$true] %s419_s5 }
  0x2c   : > { %599 = vmatpush3.msra.mxu0 %v567_v14  ;;  %v557_v48 = vclamps-f32 %v541_v43, 1.0  ;;  %v556_v50 = vclamps-f32 %v540_v46, 1.0  ;;  %vm322_vm4 = vcmask 7168   ;;  %v324_v58 = vld [vmem:[%s915_s22] sm:$0xff]  ;;  %vm396_vm5 = vcmask 261120   ;;  %s1033_s9 = sand.u32 1, %s772_s13  }
  0x2d   : > { %600 = vmatprep.subr.mxu0 %v799_v4  ;;  %v555_v52 = vclamps-f32 %v539_v49, 1.0  ;;  %v554_v53 = vclamps-f32 %v538_v51, 1.0  ;;  %s403_s10 = scalar_lea.sflag [#allocation3], %s1033_s9  ;;  %s704_s11 = scalar_lea.vmem %s420_s5, 128 }
  0x2e   : > { %601 = vmatpush3.msra.mxu0 %v566_v18  ;;  %p705_p2 = scmp.ne.s32.totalorder %s420_s5, %s704_s11  ;;  %s802_s16 = smov [#allocation2]  }
  0x2f   : > { %602 = vmatprep.subr.mxu0 %v799_v4 }
  0x30   : > { %603 = vmatpush3.msra.mxu0 %v565_v22  ;;  %p706_p4 = pnand %p705_p2, %p872_p3 }
  0x31   : > { %604 = vmatprep.subr.mxu0 %v799_v4 }
  0x32   : > { %605 = vmatpush3.msra.mxu0 %v564_v26  ;;  %p707_p5 = pneg %p706_p4 }
  0x33   : > { %606 = vmatprep.subr.mxu0 %v799_v4 }
  0x34   : > { %607 = vmatpush3.msra.mxu0 %v563_v30 }
  0x35   : > { %608 = vmatprep.subr.mxu0 %v799_v4 }
  0x36   : > { %609 = vmatpush3.msra.mxu0 %v562_v33 }
  0x37   : > { %610 = vmatprep.subr.mxu0 %v799_v4 }
  0x38   : > { %611 = vmatpush3.msra.mxu0 %v561_v36 }
  0x39   : > { %612 = vmatprep.subr.mxu0 %v799_v4 }
  0x3a   : > { %613 = vmatpush3.msra.mxu0 %v560_v39 }
  0x3b   : > { %614 = vmatprep.subr.mxu0 %v799_v4 }
  0x3c   : > { %615 = vmatpush3.msra.mxu0 %v559_v42 }
  0x3d   : > { %616 = vmatprep.subr.mxu0 %v799_v4 }
  0x3e   : > { %617 = vmatpush3.msra.mxu0 %v558_v45 }
  0x3f   : > { %618 = vmatprep.subr.mxu0 %v799_v4 }
  0x40   : > { %619 = vmatpush3.msra.mxu0 %v557_v48 }
  0x41   : > { %620 = vmatprep.subr.mxu0 %v799_v4 }
  0x42   : > { %621 = vmatpush3.msra.mxu0 %v556_v50 }
  0x43   : > { %622 = vmatprep.subr.mxu0 %v799_v4 }
  0x44   : > { %623 = vmatpush3.msra.mxu0 %v555_v52 }
  0x45   : > { %624 = vmatprep.subr.mxu0 %v799_v4 }
  0x46   : > { %625 = vmatpush3.msra.mxu0 %v554_v53 }
  0x47   : > { %627 = vmatmul.mubr.msk.f32.vlgmr.msra.gmra.mxu0 %vm315_vm3, %v801_v54 }
  0xb3   : > { %v320_v56 = vpop.xlane.xlu0 %319 }
  0xb4   : > { %v321_v57 = vadd.f32 %v320_v56, %v318_v55 }
  0xb6   : > { %323 = vst.msk [vmem:[%s913_s23] sm:$0xff] %vm322_vm4, %v321_v57  ;;  %s708_s23 = sshll.u32 %s802_s16, 4  ;;  %s709_s23 = int_to_ptr.vmem [resolvable:$false] %s708_s23 }
  0xb7   : > { %s710_s20 = scalar_lea.vmem %s709_s23, 256  ;;  %p711_p6 = scmp.lt.s32.totalorder %s420_s5, %s709_s23 }
  0xb8   : > { %p712_p7 = scmp.lt.s32.totalorder %s710_s20, %s704_s11 }
  0xba   : > { %p713_p8 = por %p712_p7, %p711_p6 }
  0xbc   : > { %p714_p10 = pnand %p713_p8, %p707_p5 }
 0x107   : > { %v391_v59 = vpop.f32.mrf.mxu0 }
 0x108   : > { %v395_v60 = vadd.f32 %v391_v59, %v324_v58 }
 0x109   : > { %v628_v61 = vpop.f32.mrf.mxu0 }
 0x10a   : > { %397 = vst.msk [vmem:[%s915_s22] sm:$0xff] %vm396_vm5, %v395_v60 }
 0x10b   : > { %717 = shalt.err (!%p714_p10)
}
 0x10c   : > { %s718_s22 = scalar_lea.hbm %s974_s8, 128  ;;  %s722_s27 = scalar_lea.hbm %s1026_s3, 256 }
 0x10d   : > { %p719_p11 = scmp.ne.s32.totalorder %s974_s8, %s718_s22  ;;  %p723_p0 = scmp.lt.s32.totalorder %s974_s8, %s1026_s3 }
 0x10e   : > { %p724_p1 = scmp.lt.s32.totalorder %s722_s27, %s718_s22 }
 0x10f   : > { %p720_p12 = pnand %p719_p11, %p872_p3 }
 0x110   : > { %p725_p2 = por %p724_p1, %p723_p0 }
 0x111   : > { %p721_p13 = pneg %p720_p12 }
 0x113   : > { %p726_p4 = pnand %p725_p2, %p721_p13 }
 0x115   : > { %729 = shalt.err (!%p726_p4)
}
 0x116   : > { %629 = dma.vmem_to_hbm [thread:$0]  (%p872_p3), %s420_s5, 128, %s974_s8, %s403_s10  }
 0x117 PF: > { %p635_p5 = scmp.ge.s32.totalorder %s796_s19, 2  ;;  %s438_s29 = sand.u32 1, %s768_s12  }
 0x118   : > { %s439_s4 = scalar_lea.sflag [#allocation3], %s438_s29 }
 0x119   : > { %p632_p6 = pnand %p635_p5, %p882_p9 }
 0x11b   : > { %p633_p7 = pneg %p632_p6 }
 0x11d   : > { %763 = dma.done.wait (%p633_p7), %s439_s4, 128  }
 0x11e   : > { %765 = vsyncadd (%p633_p7), %s439_s4, 4294967168  ;;  %s17_s19 = sadd.s32 1, %s796_s19   ;;  %s1034_s24 = sld [smem:[#allocation5_spill]] }
 0x11f   : > { %p14_p8 = scmp.ge.s32.totalorder %s17_s19, 6   ;;  %s1035_s5 = sld [smem:[#allocation6_spill]] }
 0x120   : > { %s1036_s12 = smov %s772_s13  ;;  %s1037_s13 = smov %s776_s14 }
 0x121   : > { %s1038_s14 = smov %s890_s28  ;;  %s1039_s15 = smov %s788_s17 }
 0x122   : > { %s1040_s16 = smov %s792_s18  ;;  %16 = sbr.rel (!%p14_p8) target bundleno = 5 (0x5), region = 82 }
 0x124   : > { %s1041_s17 = smov %s1034_s24 }
 0x125   : > { %s1042_s18 = smov %s1035_s5 }
 0x127   :  { %444 = vsyncpa [#allocation3], 1 }
 0x128   :  { %446 = vsyncpa [#allocation3 + $0x1], 1 }

</bundles_post_ra>
